<compile_context>
chip_gen: v6e
topology: v6e:2x2x1
jax: 0.10.0
libtpu: 0.0.40
codegen_flags: <defaults>
</compile_context>

<pallas_src>
import jax
import jax.numpy as jnp
from jax.experimental import pallas as pl
from jax.experimental.pallas import tpu as pltpu


def _round_up(x, m):
    return ((x + m - 1) // m) * m


def mlp_kernel(x_ref, w1_ref, b1_ref, w2_ref, b2_ref, w3_ref, b3_ref, o_ref):
    # Cast activations to the MXU dtype in-kernel (no padded bf16 copy of x in HBM).
    x = x_ref[...].astype(w1_ref.dtype)
    # fc1: bf16 MXU matmul, f32 accumulation; bias + ReLU in f32 on the VPU.
    h1 = jnp.dot(x, w1_ref[...], preferred_element_type=jnp.float32)
    h1 = jnp.maximum(h1 + b1_ref[...], 0.0)
    # dropout (eval mode) -> identity
    # fc2
    h2 = jnp.dot(h1.astype(w2_ref.dtype), w2_ref[...],
                 preferred_element_type=jnp.float32)
    h2 = jnp.maximum(h2 + b2_ref[...], 0.0)
    # dropout (eval mode) -> identity
    # fc3 (no activation); output columns beyond out_size are zero-padded.
    out = jnp.dot(h2.astype(w3_ref.dtype), w3_ref[...],
                  preferred_element_type=jnp.float32)
    o_ref[...] = (out + b3_ref[...]).astype(o_ref.dtype)


def prepare_params(params, *, compute_dtype=jnp.bfloat16):
    """One-time prep: cast weights to the MXU dtype and zero-pad the output
    projection to a lane-dense (multiple-of-128) width.  Call once at init."""
    w1, b1 = params["w1"], params["b1"]
    w2, b2 = params["w2"], params["b2"]
    w3, b3 = params["w3"], params["b3"]
    out_size = w3.shape[1]
    out_p = _round_up(out_size, 128)

    w3p = jnp.zeros((w3.shape[0], out_p), compute_dtype).at[:, :out_size].set(
        w3.astype(compute_dtype))
    b3p = jnp.zeros((1, out_p), jnp.float32).at[:, :out_size].set(
        b3.astype(jnp.float32).reshape(1, -1))

    return {
        "w1": w1.astype(compute_dtype),
        "b1": b1.astype(jnp.float32).reshape(1, -1),
        "w2": w2.astype(compute_dtype),
        "b2": b2.astype(jnp.float32).reshape(1, -1),
        "w3": w3p,
        "b3": b3p,
    }


def _default_tile_b(batch):
    # Tiny batch: one tile of real rows (pad only to the 8-row sublane granule).
    if batch <= 128:
        return _round_up(max(batch, 8), 8)
    # Medium batch: 128-row tiles -> matches v5e's MXU height and gives v7x's
    # two TensorCores real rows to work on (2+ parallel grid steps).
    if batch <= 512:
        return 128
    # Large batch: 256 fills v6e/v7x's 256-wide MXU and halves step count.
    return 256


def chatbot_forward(x, params, out_size, *, tile_b=None,
                    out_dtype=jnp.bfloat16, training=False):
    """x: [B, input_size] float32. params: output of prepare_params().
    Returns [B, out_size] logits in out_dtype."""
    # TODO(synk): training-mode dropout not implemented in the kernel.
    assert not training, "Kernel implements eval-mode (identity) dropout only."

    B, in_size = x.shape
    w1, b1 = params["w1"], params["b1"]
    w2, b2 = params["w2"], params["b2"]
    w3, b3 = params["w3"], params["b3"]
    assert w1.shape[0] == in_size
    H1 = w1.shape[1]            # 256
    H2 = w2.shape[1]            # 128
    out_p = w3.shape[1]         # padded output width (multiple of 128)
    assert out_size <= out_p

    if tile_b is None:
        tile_b = _default_tile_b(B)
    num_tiles = pl.cdiv(B, tile_b)
    grid = (num_tiles,)

    w_isize = jnp.dtype(w1.dtype).itemsize
    flops = 2 * B * (in_size * H1 + H1 * H2 + H2 * out_p)
    bytes_accessed = (
        B * in_size * jnp.dtype(x.dtype).itemsize        # x (read once)
        + (in_size * H1 + H1 * H2 + H2 * out_p) * w_isize  # resident weights
        + (H1 + H2 + out_p) * 4                            # f32 biases
        + B * out_p * jnp.dtype(out_dtype).itemsize        # output writeback
    )

    out_padded = pl.pallas_call(
        mlp_kernel,
        out_shape=jax.ShapeDtypeStruct((B, out_p), out_dtype),
        grid_spec=pltpu.PrefetchScalarGridSpec(
            num_scalar_prefetch=0,
            grid=grid,
            in_specs=[
                # x tile: last dim equals the full in_size (legal even if <128);
                # partial last tile only produces garbage rows that are never
                # written back (rows are independent).
                pl.BlockSpec((tile_b, in_size), lambda i: (i, 0)),
                pl.BlockSpec((in_size, H1), lambda i: (0, 0)),   # w1 (resident)
                pl.BlockSpec((1, H1), lambda i: (0, 0)),         # b1
                pl.BlockSpec((H1, H2), lambda i: (0, 0)),        # w2
                pl.BlockSpec((1, H2), lambda i: (0, 0)),         # b2
                pl.BlockSpec((H2, out_p), lambda i: (0, 0)),     # w3 (padded cols)
                pl.BlockSpec((1, out_p), lambda i: (0, 0)),      # b3 (padded cols)
            ],
            out_specs=pl.BlockSpec((tile_b, out_p), lambda i: (i, 0)),
        ),
        compiler_params=pltpu.CompilerParams(
            dimension_semantics=("parallel",),
            vmem_limit_bytes=32 * 1024 * 1024,
        ),
        cost_estimate=pl.CostEstimate(
            flops=flops, transcendentals=0, bytes_accessed=bytes_accessed),
    )(x, w1, b1, w2, b2, w3, b3)

    # Lane-dense padded store; slice of the padded columns stays lazy here.
    return out_padded[:, :out_size]


def init_params(key, input_size, output_size):
    """Deterministic init mimicking nn.Linear defaults: U(-1/sqrt(fan_in), +1/sqrt(fan_in)).
    Weights stored [in_features, out_features] (transpose of PyTorch's [out, in])."""
    ks = jax.random.split(key, 6)

    def linear(kw, kb, fan_in, fan_out):
        bound = 1.0 / jnp.sqrt(fan_in)
        w = jax.random.uniform(kw, (fan_in, fan_out), jnp.float32, -bound, bound)
        b = jax.random.uniform(kb, (1, fan_out), jnp.float32, -bound, bound)
        return w, b

    w1, b1 = linear(ks[0], ks[1], input_size, 256)
    w2, b2 = linear(ks[2], ks[3], 256, 128)
    w3, b3 = linear(ks[4], ks[5], 128, output_size)
    return {"w1": w1, "b1": b1, "w2": w2, "b2": b2, "w3": w3, "b3": b3}


def reference_forward(x, p, dtype=jnp.float32):
    """Pure-JAX reference; dtype controls the matmul input precision
    (f32 acc either way), to match the kernel's bf16 MXU path when needed."""
    def mm(a, w):
        return jnp.dot(a.astype(dtype), w.astype(dtype),
                       preferred_element_type=jnp.float32)
    h1 = jnp.maximum(mm(x, p["w1"]) + p["b1"], 0.0)
    h2 = jnp.maximum(mm(h1, p["w2"]) + p["b2"], 0.0)
    return mm(h2, p["w3"]) + p["b3"]


if __name__ == "__main__":
    key = jax.random.PRNGKey(0)
    k_x, k_p = jax.random.split(key)

    batch = 200          # not a multiple of tile_b -> exercises the partial tile
    input_size = 64      # e.g. bag-of-words vocabulary size
    output_size = 16     # number of intent classes

    x = jax.random.normal(k_x, (batch, input_size), dtype=jnp.float32)
    raw_params = init_params(k_p, input_size, output_size)

    # One-time weight prep (pad + bf16 cast) outside the per-call path.
    params = prepare_params(raw_params)

    fwd = jax.jit(lambda xx, pp: chatbot_forward(xx, pp, out_size=output_size))
    out = jax.block_until_ready(fwd(x, params))
    assert out.shape == (batch, output_size)
    assert out.dtype == jnp.bfloat16

    out_f32 = out.astype(jnp.float32)

    # Matched-precision reference (bf16 matmul inputs, f32 acc, bf16 output cast).
    ref_bf16 = reference_forward(x, raw_params, dtype=jnp.bfloat16)
    ref_bf16 = ref_bf16.astype(jnp.bfloat16).astype(jnp.float32)
    assert jnp.allclose(out_f32, ref_bf16, atol=1e-2, rtol=1e-2)

    # Loose check against the full-f32 reference (bf16 quantization error only).
    ref_f32 = reference_forward(x, raw_params, dtype=jnp.float32)
    assert jnp.allclose(out_f32, ref_f32, atol=6e-2, rtol=6e-2)

    print("KERNEL_OK")
</pallas_src>

<mosaic_0001>
module attributes {stable_mosaic.version = 11 : i64} {
  func.func @mlp_kernel(%arg0: i32, %arg1: memref<128x64xf32, #tpu.memory_space<vmem>>, %arg2: memref<64x256xbf16, #tpu.memory_space<vmem>>, %arg3: memref<1x256xf32, #tpu.memory_space<vmem>>, %arg4: memref<256x128xbf16, #tpu.memory_space<vmem>>, %arg5: memref<1x128xf32, #tpu.memory_space<vmem>>, %arg6: memref<128x128xbf16, #tpu.memory_space<vmem>>, %arg7: memref<1x128xf32, #tpu.memory_space<vmem>>, %arg8: memref<128x128xbf16, #tpu.memory_space<vmem>>) attributes {dimension_semantics = [#tpu.dimension_semantics<parallel>], iteration_bounds = array<i64: 2>, scalar_prefetch = 0 : i64, scratch_operands = 0 : i64, tpu.core_type = #tpu.core_type<tc>, window_params = [{transform_indices = @transform_0, window_bounds = array<i64: 128, 64>}, {pipeline_mode = #tpu.pipeline_mode<synchronous>, transform_indices = @transform_1, window_bounds = array<i64: 64, 256>}, {pipeline_mode = #tpu.pipeline_mode<synchronous>, transform_indices = @transform_2, window_bounds = array<i64: 1, 256>}, {pipeline_mode = #tpu.pipeline_mode<synchronous>, transform_indices = @transform_3, window_bounds = array<i64: 256, 128>}, {pipeline_mode = #tpu.pipeline_mode<synchronous>, transform_indices = @transform_4, window_bounds = array<i64: 1, 128>}, {pipeline_mode = #tpu.pipeline_mode<synchronous>, transform_indices = @transform_5, window_bounds = array<i64: 128, 128>}, {pipeline_mode = #tpu.pipeline_mode<synchronous>, transform_indices = @transform_6, window_bounds = array<i64: 1, 128>}, {transform_indices = @transform_7, window_bounds = array<i64: 128, 128>}]} {
    %c0 = arith.constant 0 : index
    %c0_0 = arith.constant 0 : index
    %0 = vector.load %arg1[%c0, %c0_0] : memref<128x64xf32, #tpu.memory_space<vmem>>, vector<128x64xf32>
    %1 = arith.truncf %0 : vector<128x64xf32> to vector<128x64xbf16>
    %c0_1 = arith.constant 0 : index
    %c0_2 = arith.constant 0 : index
    %2 = vector.load %arg2[%c0_1, %c0_2] : memref<64x256xbf16, #tpu.memory_space<vmem>>, vector<64x256xbf16>
    %cst = arith.constant dense<0.000000e+00> : vector<128x256xf32>
    %3 = tpu.matmul %1, %2, %cst {dimension_numbers = #tpu.dot_dimension_numbers<[1], [0], [0], [1], [0, 0, 1, 1], [], []>} : vector<128x64xbf16>, vector<64x256xbf16>, vector<128x256xf32> -> vector<128x256xf32>
    %c0_3 = arith.constant 0 : index
    %c0_4 = arith.constant 0 : index
    %4 = vector.load %arg3[%c0_3, %c0_4] : memref<1x256xf32, #tpu.memory_space<vmem>>, vector<1x256xf32>
    %5 = vector.broadcast %4 : vector<1x256xf32> to vector<128x256xf32>
    %6 = arith.addf %3, %5 : vector<128x256xf32>
    %cst_5 = arith.constant 0.000000e+00 : f32
    %7 = vector.broadcast %cst_5 : f32 to vector<128x256xf32>
    %8 = arith.maximumf %6, %7 : vector<128x256xf32>
    %9 = arith.truncf %8 : vector<128x256xf32> to vector<128x256xbf16>
    %c0_6 = arith.constant 0 : index
    %c0_7 = arith.constant 0 : index
    %10 = vector.load %arg4[%c0_6, %c0_7] : memref<256x128xbf16, #tpu.memory_space<vmem>>, vector<256x128xbf16>
    %cst_8 = arith.constant dense<0.000000e+00> : vector<128x128xf32>
    %11 = tpu.matmul %9, %10, %cst_8 {dimension_numbers = #tpu.dot_dimension_numbers<[1], [0], [0], [1], [0, 0, 1, 1], [], []>} : vector<128x256xbf16>, vector<256x128xbf16>, vector<128x128xf32> -> vector<128x128xf32>
    %c0_9 = arith.constant 0 : index
    %c0_10 = arith.constant 0 : index
    %12 = vector.load %arg5[%c0_9, %c0_10] : memref<1x128xf32, #tpu.memory_space<vmem>>, vector<1x128xf32>
    %13 = vector.broadcast %12 : vector<1x128xf32> to vector<128x128xf32>
    %14 = arith.addf %11, %13 : vector<128x128xf32>
    %cst_11 = arith.constant 0.000000e+00 : f32
    %15 = vector.broadcast %cst_11 : f32 to vector<128x128xf32>
    %16 = arith.maximumf %14, %15 : vector<128x128xf32>
    %17 = arith.truncf %16 : vector<128x128xf32> to vector<128x128xbf16>
    %c0_12 = arith.constant 0 : index
    %c0_13 = arith.constant 0 : index
    %18 = vector.load %arg6[%c0_12, %c0_13] : memref<128x128xbf16, #tpu.memory_space<vmem>>, vector<128x128xbf16>
    %cst_14 = arith.constant dense<0.000000e+00> : vector<128x128xf32>
    %19 = tpu.matmul %17, %18, %cst_14 {dimension_numbers = #tpu.dot_dimension_numbers<[1], [0], [0], [1], [0, 0, 1, 1], [], []>} : vector<128x128xbf16>, vector<128x128xbf16>, vector<128x128xf32> -> vector<128x128xf32>
    %c0_15 = arith.constant 0 : index
    %c0_16 = arith.constant 0 : index
    %20 = vector.load %arg7[%c0_15, %c0_16] : memref<1x128xf32, #tpu.memory_space<vmem>>, vector<1x128xf32>
    %21 = vector.broadcast %20 : vector<1x128xf32> to vector<128x128xf32>
    %22 = arith.addf %19, %21 : vector<128x128xf32>
    %23 = arith.truncf %22 : vector<128x128xf32> to vector<128x128xbf16>
    %c0_17 = arith.constant 0 : index
    %c0_18 = arith.constant 0 : index
    %24 = vector.load %arg8[%c0_17, %c0_18] : memref<128x128xbf16, #tpu.memory_space<vmem>>, vector<128x128xbf16>
    tpu.vector_store %arg8[%c0_17, %c0_18], %23 {strides = array<i32>} : memref<128x128xbf16, #tpu.memory_space<vmem>>, vector<128x128xbf16>,
    return
  }
  func.func @transform_0(%arg0: i32) -> (i32, i32) {
    %c0_i32 = arith.constant 0 : i32
    %c0_i32_0 = arith.constant 0 : i32
    return %arg0, %c0_i32 : i32, i32
  }
  func.func @transform_1(%arg0: i32) -> (i32, i32) {
    %c0_i32 = arith.constant 0 : i32
    %c0_i32_0 = arith.constant 0 : i32
    %c0_i32_1 = arith.constant 0 : i32
    return %c0_i32, %c0_i32_0 : i32, i32
  }
  func.func @transform_2(%arg0: i32) -> (i32, i32) {
    %c0_i32 = arith.constant 0 : i32
    %c0_i32_0 = arith.constant 0 : i32
    %c0_i32_1 = arith.constant 0 : i32
    return %c0_i32, %c0_i32_0 : i32, i32
  }
  func.func @transform_3(%arg0: i32) -> (i32, i32) {
    %c0_i32 = arith.constant 0 : i32
    %c0_i32_0 = arith.constant 0 : i32
    %c0_i32_1 = arith.constant 0 : i32
    return %c0_i32, %c0_i32_0 : i32, i32
  }
  func.func @transform_4(%arg0: i32) -> (i32, i32) {
    %c0_i32 = arith.constant 0 : i32
    %c0_i32_0 = arith.constant 0 : i32
    %c0_i32_1 = arith.constant 0 : i32
    return %c0_i32, %c0_i32_0 : i32, i32
  }
  func.func @transform_5(%arg0: i32) -> (i32, i32) {
    %c0_i32 = arith.constant 0 : i32
    %c0_i32_0 = arith.constant 0 : i32
    %c0_i32_1 = arith.constant 0 : i32
    return %c0_i32, %c0_i32_0 : i32, i32
  }
  func.func @transform_6(%arg0: i32) -> (i32, i32) {
    %c0_i32 = arith.constant 0 : i32
    %c0_i32_0 = arith.constant 0 : i32
    %c0_i32_1 = arith.constant 0 : i32
    return %c0_i32, %c0_i32_0 : i32, i32
  }
  func.func @transform_7(%arg0: i32) -> (i32, i32) {
    %c0_i32 = arith.constant 0 : i32
    %c0_i32_0 = arith.constant 0 : i32
    return %arg0, %c0_i32 : i32, i32
  }
}

</mosaic_0001>

<bundles_post_ra>
// kernel: _lambda_.1
= control target key start
LH: loop header
LB: loop body
LE: loop exit
PB: predicated region body
PF: predicated region fallthrough
CT: control target
= control target key end

     0   :  { %s1881_s24 = smov 0   ;;  %s1883_s25 = smov 0   ;;  %s2225_s0 = inlined_call_operand.vmem [shape: f32[200,64], index: 0, kind: input, shape index: {}]   ;;  %s2226_s1 = inlined_call_operand.vmem [shape: bf16[64,256], index: 1, kind: input, shape index: {}]   ;;  %s2227_s2 = inlined_call_operand.vmem [shape: f32[1,256], index: 2, kind: input, shape index: {}]   ;;  %s2228_s3 = inlined_call_operand.vmem [shape: bf16[256,128], index: 3, kind: input, shape index: {}]   ;;  %s2229_s4 = inlined_call_operand.vmem [shape: f32[1,128], index: 4, kind: input, shape index: {}]   ;;  %s2230_s5 = inlined_call_operand.vmem [shape: bf16[128,128], index: 5, kind: input, shape index: {}]   ;;  %s2231_s6 = inlined_call_operand.vmem [shape: f32[1,128], index: 6, kind: input, shape index: {}]   ;;  %s2232_s7 = inlined_call_operand.vmem [shape: bf16[200,128], index: 7, kind: output, shape index: {}]  }
   0x1   :  { %s1885_s26 = smov 0  }
   0x2 LB: > { %s1894_s27 = sadd.s32 4294967295, %s1806_s26   ;;  %s1896_s28 = sadd.s32 1, %s1806_s26   ;;  %s1806_s26 = sphi %s1885_s26, %s2239_s26   ;;  %s1802_s25 = sphi %s1883_s25, %s2238_s25   ;;  %s1798_s24 = sphi %s1881_s24, %s2237_s24  }
   0x3   : > { %s173_s29 = ssub.s32 %s1806_s26, %s1896_s28  ;;  %s176_s30 = sadd.s32 1, %s1802_s25 }
   0x4   : > { %p174_p0 = scmp.eq.s32.totalorder %s173_s29, 0  ;;  %p186_p1 = scmp.ne.s32.totalorder %s1802_s25, %s1798_s24 }
   0x5   : > { %p187_p2 = scmp.eq.s32.totalorder %s1894_s27, 1  ;;  %p1354_p3 = scmp.ge.s32.totalorder %s1806_s26, 1 }
   0x6   : > { %s1904_s8 = scalar_select %p174_p0, %s1802_s25, %s176_s30  }
   0x7   : > { %p1906_p4 = por %p187_p2, %p186_p1  ;;  %p246_p5 = scmp.lt.s32.totalorder %s1806_s26, 3 }
   0x9   : > { %p247_p6 = pnand %p1354_p3, %p246_p5 }
   0xa   : > { %s1914_s12 = sshll.u32 (!%p247_p6), %s1894_s27, 4  ;;  %s278_s21 = sand.u32 (!%p247_p6), 1, %s1798_s24  }
   0xb   : > { %250 = sbr.rel (%p247_p6) target bundleno = 755 (0x2f3), region = 48  ;;  %p286_p7 = scmp.lt.s32.totalorder (!%p247_p6), %s1914_s12, 24 }
   0xc   : > { %s1355_s26 = sshll.u32 (!%p247_p6), %s278_s21, 6 }
   0xd   : > { %s2112_s29 = scalar_lea.vmem (!%p247_p6), [#allocation2], %s1355_s26  }
  0x10   : > { %v1716_v0 = vld [vmem:[%s2226_s1 + $0x34] ss:$8 sps:$4 sm:$0xff]   ;;  %v1718_v1 = vld [vmem:[%s2226_s1 + $0x30] ss:$8 sps:$4 sm:$0xff]   ;;  %v1840_v2 = vmov 0   ;;  %s287_s19 = scalar_select %p286_p7, %s1914_s12, 24  ;;  %v335_v52 = vlaneseq }
  0x11   : > { %442 = vmatprep.mubr.bf16.mxu0 %v1840_v2  ;;  %418 = vmatprep.subr.bf16.mxu0 %v1716_v0  ;;  %v1719_v3 = vld [vmem:[%s2226_s1 + $0x24] ss:$8 sps:$4 sm:$0xff]   ;;  %v1721_v4 = vld [vmem:[%s2226_s1 + $0x20] ss:$8 sps:$4 sm:$0xff]   ;;  %v1722_v5 = vld [vmem:[%s2226_s1 + $0x14] ss:$8 sps:$4 sm:$0xff]  }
  0x12   : > { %419 = vmatpush1.bf16.msra.mxu0 %v1718_v1  ;;  %s1357_s22 = sshll.u32 %s287_s19, 3  ;;  %v1728_v6 = vld [vmem:[%s2228_s3 + $0x78] sm:$0xff]   ;;  %v1725_v8 = vld [vmem:[%s2226_s1 + $0x4] ss:$8 sps:$4 sm:$0xff]   ;;  %v1727_v9 = vld [vmem:[%s2226_s1] ss:$8 sps:$4 sm:$0xff]  }
  0x13   : > { %420 = vmatprep.subr.bf16.mxu0 %v1719_v3  ;;  %v1724_v7 = vld [vmem:[%s2226_s1 + $0x10] ss:$8 sps:$4 sm:$0xff]   ;;  %1499 = vmatprep.subr.bf16.mxu1 %v1728_v6  ;;  %s1943_s15 = scalar_lea.vmem %s2225_s0, %s1357_s22  ;;  %vm385_vm0 = vcmask 523264   ;;  %v1732_v16 = vld [vmem:[%s2228_s3 + $0x68] sm:$0xff]   ;;  %v1734_v20 = vld [vmem:[%s2228_s3 + $0x60] sm:$0xff]   ;;  %v336_v53 = vshrl.u32 %v335_v52, 7 }
  0x14   : > { %v301_v10 = vld [vmem:[%s1943_s15] sm:$0xff]  ;;  %v302_v11 = vld [vmem:[%s1943_s15 + $0x8] sm:$0xff]  ;;  %v1729_v12 = vld [vmem:[%s2228_s3 + $0x38] sm:$0xff]   ;;  %s1083_s24 = ssub.s32 (%p1906_p4), 25, %s1914_s12  ;;  %s1449_s30 = sshll.u32 (%p1906_p4), %s1894_s27, 6 }
  0x15   : > { %v1730_v13 = vld [vmem:[%s2228_s3 + $0x70] sm:$0xff]   ;;  %v317_v14 = vpack.c.bf16 %v302_v11, %v301_v10  ;;  %1500 = vmatpush3.bf16.msra.mxu1 %v1729_v12  ;;  %v304_v18 = vld [vmem:[%s1943_s15 + $0x18] sm:$0xff]  ;;  %v1733_v19 = vld [vmem:[%s2228_s3 + $0x28] sm:$0xff]   ;;  %v341_v54 = vsub.s32 1, %v336_v53  ;;  %v337_v55 = vsub.s32 0, %v336_v53  ;;  %p1084_p8 = scmp.lt.s32.totalorder (%p1906_p4), %s1083_s24, 16 }
  0x16   : > { %421 = vmatpush1.bf16.msra.mxu0 %v1721_v4  ;;  %v1731_v15 = vld [vmem:[%s2228_s3 + $0x30] sm:$0xff]   ;;  %1501 = vmatprep.subr.bf16.mxu1 %v1730_v13  ;;  %v1735_v21 = vld [vmem:[%s2228_s3 + $0x20] sm:$0xff]   ;;  %v1736_v22 = vld [vmem:[%s2228_s3 + $0x58] sm:$0xff]  }
  0x17   : > { %422 = vmatprep.subr.bf16.mxu0 %v1722_v5  ;;  %v303_v17 = vld [vmem:[%s1943_s15 + $0x10] sm:$0xff]  ;;  %v1737_v24 = vld [vmem:[%s2228_s3 + $0x18] sm:$0xff]   ;;  %v305_v25 = vld [vmem:[%s1943_s15 + $0x20] sm:$0xff] }
  0x18   : > { %v318_v23 = vpack.c.bf16 %v304_v18, %v303_v17  ;;  %v306_v26 = vld [vmem:[%s1943_s15 + $0x28] sm:$0xff]  ;;  %v307_v28 = vld [vmem:[%s1943_s15 + $0x30] sm:$0xff]  ;;  %v308_v29 = vld [vmem:[%s1943_s15 + $0x38] sm:$0xff] }
  0x19   : > { %1502 = vmatpush3.bf16.msra.mxu1 %v1731_v15  ;;  %v319_v27 = vpack.c.bf16 %v306_v26, %v305_v25  ;;  %v320_v30 = vpack.c.bf16 %v308_v29, %v307_v28  ;;  %v309_v31 = vld [vmem:[%s1943_s15 + $0x40] sm:$0xff]  ;;  %v310_v32 = vld [vmem:[%s1943_s15 + $0x48] sm:$0xff]  ;;  %v311_v34 = vld [vmem:[%s1943_s15 + $0x50] sm:$0xff] }
  0x1a   : > { %423 = vmatpush1.bf16.msra.mxu0 %v1724_v7  ;;  %1503 = vmatprep.subr.bf16.mxu1 %v1732_v16  ;;  %v321_v33 = vpack.c.bf16 %v310_v32, %v309_v31  ;;  %v312_v35 = vld [vmem:[%s1943_s15 + $0x58] sm:$0xff]  ;;  %v313_v37 = vld [vmem:[%s1943_s15 + $0x60] sm:$0xff]  ;;  %v314_v38 = vld [vmem:[%s1943_s15 + $0x68] sm:$0xff] }
  0x1b   : > { %424 = vmatprep.subr.bf16.mxu0 %v1725_v8  ;;  %v322_v36 = vpack.c.bf16 %v312_v35, %v311_v34  ;;  %v323_v39 = vpack.c.bf16 %v314_v38, %v313_v37  ;;  %v315_v40 = vld [vmem:[%s1943_s15 + $0x70] sm:$0xff]  ;;  %v316_v41 = vld [vmem:[%s1943_s15 + $0x78] sm:$0xff]  ;;  %v1740_v45 = vld [vmem:[%s2228_s3 + $0x48] sm:$0xff]   ;;  %s2129_s15 = scalar_lea.vmem (%p1906_p4), %s2232_s7, %s1449_s30  }
  0x1c   : > { %v324_v42 = vpack.c.bf16 %v316_v41, %v315_v40  ;;  %v1738_v43 = vld [vmem:[%s2228_s3 + $0x50] sm:$0xff]   ;;  %v1741_v46 = vld [vmem:[%s2228_s3 + $0x8] sm:$0xff]   ;;  %v1742_v47 = vld [vmem:[%s2228_s3 + $0x40] sm:$0xff]  }
  0x1d   : > { %1504 = vmatpush3.bf16.msra.mxu1 %v1733_v19  ;;  %v1739_v44 = vld [vmem:[%s2228_s3 + $0x10] sm:$0xff]   ;;  %v1743_v48 = vld [vmem:[%s2228_s3] sm:$0xff]   ;;  %v1744_v49 = vld [vmem:[%s2230_s5 + $0x38] sm:$0xff]  }
  0x1e   : > { %425 = vmatpush1.bf16.msra.mxu0 %v1727_v9  ;;  %1505 = vmatprep.subr.bf16.mxu1 %v1734_v20  ;;  %v1745_v50 = vld [vmem:[%s2230_s5 + $0x30] sm:$0xff]   ;;  %v1746_v51 = vld [vmem:[%s2230_s5 + $0x28] sm:$0xff]   ;;  %v333_v56 = vld [vmem:[%s2227_s2] sm:$0x3] }
  0x1f   : > { %1579 = vmatprep.subr.bf16.mxu0 %v1744_v49  ;;  %v2036_v58 = vrot.slane %v333_v56, %v341_v54  ;;  %v2038_v59 = vrot.slane %v333_v56, %v337_v55 }
  0x21   : > { %1366 = vmatmul.mubr.msk.bf16.vlgmr.msra.gmra.mxu0 %vm385_vm0, %v317_v14  ;;  %1506 = vmatpush3.bf16.msra.mxu1 %v1735_v21 }
  0x22   : > { %452 = vmatprep.mubr.bf16.mxu0 %v1840_v2  ;;  %1507 = vmatprep.subr.bf16.mxu1 %v1736_v22 }
  0x23   : > { %1580 = vmatpush3.bf16.msra.mxu0 %v1744_v49 }
  0x24   : > { %1581 = vmatprep.subr.bf16.mxu0 %v1745_v50 }
  0x25   : > { %1508 = vmatpush3.bf16.msra.mxu1 %v1737_v24 }
  0x26   : > { %1509 = vmatprep.subr.bf16.mxu1 %v1738_v43 }
  0x27   : > { %1582 = vmatpush3.bf16.msra.mxu0 %v1745_v50 }
  0x28   : > { %1583 = vmatprep.subr.bf16.mxu0 %v1746_v51 }
  0x29   : > { %1367 = vmatmul.mubr.msk.bf16.gmra.mxu0 %vm385_vm0, %v318_v23  ;;  %1510 = vmatpush3.bf16.msra.mxu1 %v1739_v44 }
  0x2a   : > { %462 = vmatprep.mubr.bf16.mxu0 %v1840_v2  ;;  %1511 = vmatprep.subr.bf16.mxu1 %v1740_v45 }
  0x2b   : > { %1584 = vmatpush3.bf16.msra.mxu0 %v1746_v51 }
  0x2d   : > { %1512 = vmatpush3.bf16.msra.mxu1 %v1741_v46 }
  0x2e   : > { %1513 = vmatprep.subr.bf16.mxu1 %v1742_v47 }
  0x31   : > { %1368 = vmatmul.mubr.msk.bf16.gmra.mxu0 %vm385_vm0, %v319_v27  ;;  %1514 = vmatpush3.bf16.msra.mxu1 %v1743_v48 }
  0x32   : > { %472 = vmatprep.mubr.bf16.mxu0 %v1840_v2  ;;  %1611 = vmatprep.subr.bf16.mxu1 %v1744_v49 }
  0x39   : > { %1369 = vmatmul.mubr.msk.bf16.gmra.mxu0 %vm385_vm0, %v320_v30 }
  0x3a   : > { %482 = vmatprep.mubr.bf16.mxu0 %v1840_v2 }
  0x41   : > { %1370 = vmatmul.mubr.msk.bf16.gmra.mxu0 %vm385_vm0, %v321_v33 }
  0x42   : > { %492 = vmatprep.mubr.bf16.mxu0 %v1840_v2 }
  0x49   : > { %1371 = vmatmul.mubr.msk.bf16.gmra.mxu0 %vm385_vm0, %v322_v36 }
  0x4a   : > { %502 = vmatprep.mubr.bf16.mxu0 %v1840_v2 }
  0x51   : > { %1372 = vmatmul.mubr.msk.bf16.gmra.mxu0 %vm385_vm0, %v323_v39 }
  0x52   : > { %512 = vmatprep.mubr.bf16.mxu0 %v1840_v2 }
  0x59   : > { %1373 = vmatmul.mubr.msk.bf16.gmra.mxu0 %vm385_vm0, %v324_v42 }
  0xe1   : > { %v444_v57 = vpop.f32.mrf.mxu0 }
  0xe2   : > { %v445_v0 = vadd.f32 %v444_v57, %v2038_v59 }
  0xe3   : > { %v446_v60 = vpop.f32.mrf.mxu0 }
  0xe4   : > { %v447_v62 = vadd.f32 %v446_v60, %v2036_v58  ;;  %v523_v7 = vmax.f32 %v445_v0, 0.0 }
  0xe5   : > { %v448_v61 = vpop.f32.mrf.mxu0 }
  0xe6   : > { %v449_v63 = vadd.f32 %v448_v61, %v2038_v59  ;;  %v524_v5 = vmax.f32 %v447_v62, 0.0 }
  0xe7   : > { %v450_v1 = vpop.f32.mrf.mxu0 }
  0xe8   : > { %v451_v2 = vadd.f32 %v450_v1, %v2036_v58  ;;  %v525_v3 = vmax.f32 %v449_v63, 0.0 }
  0xe9   : > { %v454_v4 = vpop.f32.mrf.mxu0 }
  0xea   : > { %v526_v6 = vmax.f32 %v451_v2, 0.0  ;;  %v555_v10 = vpack.c.bf16 %v525_v3, %v523_v7  ;;  %v455_v14 = vadd.f32 %v454_v4, %v2038_v59 }
  0xeb   : > { %v456_v8 = vpop.f32.mrf.mxu0 }
  0xec   : > { %v556_v9 = vpack.c.bf16 %v526_v6, %v524_v5  ;;  %v457_v12 = vadd.f32 %v456_v8, %v2036_v58  ;;  %v527_v21 = vmax.f32 %v455_v14, 0.0 }
  0xed   : > { %v458_v11 = vpop.f32.mrf.mxu0 }
  0xee   : > { %v459_v13 = vadd.f32 %v458_v11, %v2038_v59  ;;  %738 = vmatprep.mubr.bf16.mxu1 %v556_v9  ;;  %v528_v19 = vmax.f32 %v457_v12, 0.0 }
  0xef   : > { %v460_v15 = vpop.f32.mrf.mxu0  ;;  %739 = vmatmul.mubr.bf16.vlgmr.msra.gmra.mxu1 %v555_v10 }
  0xf0   : > { %v461_v16 = vadd.f32 %v460_v15, %v2036_v58  ;;  %1619 = vmatpush3.bf16.msra.mxu1 %v1744_v49  ;;  %v529_v17 = vmax.f32 %v459_v13, 0.0 }
  0xf1   : > { %v464_v18 = vpop.f32.mrf.mxu0  ;;  %1612 = vmatprep.subr.bf16.mxu1 %v1745_v50 }
  0xf2   : > { %v530_v20 = vmax.f32 %v461_v16, 0.0  ;;  %v557_v24 = vpack.c.bf16 %v529_v17, %v527_v21  ;;  %v465_v28 = vadd.f32 %v464_v18, %v2038_v59 }
  0xf3   : > { %v466_v22 = vpop.f32.mrf.mxu0 }
  0xf4   : > { %v558_v23 = vpack.c.bf16 %v530_v20, %v528_v19  ;;  %1620 = vmatpush3.bf16.msra.mxu1 %v1745_v50  ;;  %v467_v26 = vadd.f32 %v466_v22, %v2036_v58  ;;  %v531_v35 = vmax.f32 %v465_v28, 0.0 }
  0xf5   : > { %v468_v25 = vpop.f32.mrf.mxu0  ;;  %1613 = vmatprep.subr.bf16.mxu1 %v1746_v51 }
  0xf6   : > { %v469_v27 = vadd.f32 %v468_v25, %v2038_v59  ;;  %746 = vmatprep.mubr.bf16.mxu1 %v558_v23  ;;  %v532_v33 = vmax.f32 %v467_v26, 0.0 }
  0xf7   : > { %v470_v29 = vpop.f32.mrf.mxu0  ;;  %747 = vmatmul.mubr.bf16.gmra.mxu1 %v557_v24 }
  0xf8   : > { %v471_v30 = vadd.f32 %v470_v29, %v2036_v58  ;;  %1621 = vmatpush3.bf16.msra.mxu1 %v1746_v51  ;;  %v533_v31 = vmax.f32 %v469_v27, 0.0 }
  0xf9   : > { %v474_v32 = vpop.f32.mrf.mxu0 }
  0xfa   : > { %v534_v34 = vmax.f32 %v471_v30, 0.0  ;;  %v559_v38 = vpack.c.bf16 %v533_v31, %v531_v35  ;;  %v475_v42 = vadd.f32 %v474_v32, %v2038_v59 }
  0xfb   : > { %v476_v36 = vpop.f32.mrf.mxu0 }
  0xfc   : > { %v560_v37 = vpack.c.bf16 %v534_v34, %v532_v33  ;;  %v477_v40 = vadd.f32 %v476_v36, %v2036_v58  ;;  %v535_v49 = vmax.f32 %v475_v42, 0.0 }
  0xfd   : > { %v478_v39 = vpop.f32.mrf.mxu0 }
  0xfe   : > { %v479_v41 = vadd.f32 %v478_v39, %v2038_v59  ;;  %754 = vmatprep.mubr.bf16.mxu1 %v560_v37  ;;  %v536_v47 = vmax.f32 %v477_v40, 0.0 }
  0xff   : > { %v480_v43 = vpop.f32.mrf.mxu0  ;;  %755 = vmatmul.mubr.bf16.gmra.mxu1 %v559_v38 }
 0x100   : > { %v481_v44 = vadd.f32 %v480_v43, %v2036_v58  ;;  %v537_v45 = vmax.f32 %v479_v41, 0.0 }
 0x101   : > { %v484_v46 = vpop.f32.mrf.mxu0 }
 0x102   : > { %v538_v48 = vmax.f32 %v481_v44, 0.0  ;;  %v561_v52 = vpack.c.bf16 %v537_v45, %v535_v49  ;;  %v485_v56 = vadd.f32 %v484_v46, %v2038_v59  ;;  %v1747_v45 = vld [vmem:[%s2230_s5 + $0x20] sm:$0xff]   ;;  %v1750_v46 = vld [vmem:[%s2230_s5 + $0x8] sm:$0xff]  }
 0x103   : > { %v486_v50 = vpop.f32.mrf.mxu0  ;;  %1585 = vmatprep.subr.bf16.mxu0 %v1747_v45  ;;  %1614 = vmatprep.subr.bf16.mxu1 %v1747_v45 }
 0x104   : > { %v562_v51 = vpack.c.bf16 %v538_v48, %v536_v47  ;;  %v487_v54 = vadd.f32 %v486_v50, %v2036_v58  ;;  %v539_v1 = vmax.f32 %v485_v56, 0.0  ;;  %1586 = vmatpush3.bf16.msra.mxu0 %v1747_v45  ;;  %1622 = vmatpush3.bf16.msra.mxu1 %v1747_v45  ;;  %v1751_v47 = vld [vmem:[%s2230_s5] sm:$0xff]  }
 0x105   : > { %v488_v53 = vpop.f32.mrf.mxu0 }
 0x106   : > { %v489_v55 = vadd.f32 %v488_v53, %v2038_v59  ;;  %762 = vmatprep.mubr.bf16.mxu1 %v562_v51  ;;  %v540_v63 = vmax.f32 %v487_v54, 0.0  ;;  %v2090_v51 = vld [vmem:[%s2229_s4] ss:$0 sm:$0xff] }
 0x107   : > { %v490_v57 = vpop.f32.mrf.mxu0  ;;  %763 = vmatmul.mubr.bf16.gmra.mxu1 %v561_v52 }
 0x108   : > { %v491_v60 = vadd.f32 %v490_v57, %v2036_v58  ;;  %v541_v61 = vmax.f32 %v489_v55, 0.0 }
 0x109   : > { %v494_v62 = vpop.f32.mrf.mxu0 }
 0x10a   : > { %v542_v0 = vmax.f32 %v491_v60, 0.0  ;;  %v563_v4 = vpack.c.bf16 %v541_v61, %v539_v1  ;;  %v495_v8 = vadd.f32 %v494_v62, %v2038_v59 }
 0x10b   : > { %v496_v2 = vpop.f32.mrf.mxu0 }
 0x10c   : > { %v564_v3 = vpack.c.bf16 %v542_v0, %v540_v63  ;;  %v497_v6 = vadd.f32 %v496_v2, %v2036_v58  ;;  %v543_v15 = vmax.f32 %v495_v8, 0.0 }
 0x10d   : > { %v498_v5 = vpop.f32.mrf.mxu0 }
 0x10e   : > { %v499_v7 = vadd.f32 %v498_v5, %v2038_v59  ;;  %770 = vmatprep.mubr.bf16.mxu1 %v564_v3  ;;  %v544_v13 = vmax.f32 %v497_v6, 0.0 }
 0x10f   : > { %v500_v9 = vpop.f32.mrf.mxu0  ;;  %771 = vmatmul.mubr.bf16.gmra.mxu1 %v563_v4 }
 0x110   : > { %v501_v10 = vadd.f32 %v500_v9, %v2036_v58  ;;  %v545_v11 = vmax.f32 %v499_v7, 0.0 }
 0x111   : > { %v504_v12 = vpop.f32.mrf.mxu0 }
 0x112   : > { %v546_v14 = vmax.f32 %v501_v10, 0.0  ;;  %v565_v18 = vpack.c.bf16 %v545_v11, %v543_v15  ;;  %v505_v22 = vadd.f32 %v504_v12, %v2038_v59 }
 0x113   : > { %v506_v16 = vpop.f32.mrf.mxu0 }
 0x114   : > { %v566_v17 = vpack.c.bf16 %v546_v14, %v544_v13  ;;  %v507_v20 = vadd.f32 %v506_v16, %v2036_v58  ;;  %v547_v29 = vmax.f32 %v505_v22, 0.0 }
 0x115   : > { %v508_v19 = vpop.f32.mrf.mxu0 }
 0x116   : > { %v509_v21 = vadd.f32 %v508_v19, %v2038_v59  ;;  %778 = vmatprep.mubr.bf16.mxu1 %v566_v17  ;;  %v548_v27 = vmax.f32 %v507_v20, 0.0 }
 0x117   : > { %v510_v23 = vpop.f32.mrf.mxu0  ;;  %779 = vmatmul.mubr.bf16.gmra.mxu1 %v565_v18 }
 0x118   : > { %v511_v24 = vadd.f32 %v510_v23, %v2036_v58  ;;  %v549_v25 = vmax.f32 %v509_v21, 0.0 }
 0x119   : > { %v514_v26 = vpop.f32.mrf.mxu0 }
 0x11a   : > { %v550_v28 = vmax.f32 %v511_v24, 0.0  ;;  %v567_v32 = vpack.c.bf16 %v549_v25, %v547_v29  ;;  %v515_v36 = vadd.f32 %v514_v26, %v2038_v59 }
 0x11b   : > { %v516_v30 = vpop.f32.mrf.mxu0 }
 0x11c   : > { %v568_v31 = vpack.c.bf16 %v550_v28, %v548_v27  ;;  %v517_v34 = vadd.f32 %v516_v30, %v2036_v58  ;;  %v551_v42 = vmax.f32 %v515_v36, 0.0 }
 0x11d   : > { %v518_v33 = vpop.f32.mrf.mxu0 }
 0x11e   : > { %v519_v35 = vadd.f32 %v518_v33, %v2038_v59  ;;  %786 = vmatprep.mubr.bf16.mxu1 %v568_v31  ;;  %v552_v40 = vmax.f32 %v517_v34, 0.0  ;;  %v1749_v59 = vld [vmem:[%s2230_s5 + $0x10] sm:$0xff]  }
 0x11f   : > { %v520_v37 = vpop.f32.mrf.mxu0  ;;  %787 = vmatmul.mubr.bf16.gmra.mxu1 %v567_v32 }
 0x120   : > { %v521_v38 = vadd.f32 %v520_v37, %v2036_v58  ;;  %v553_v39 = vmax.f32 %v519_v35, 0.0  ;;  %v1748_v58 = vld [vmem:[%s2230_s5 + $0x18] sm:$0xff]  }
 0x121   : > { %1587 = vmatprep.subr.bf16.mxu0 %v1748_v58  ;;  %1615 = vmatprep.subr.bf16.mxu1 %v1748_v58 }
 0x122   : > { %v554_v41 = vmax.f32 %v521_v38, 0.0  ;;  %v569_v44 = vpack.c.bf16 %v553_v39, %v551_v42  ;;  %1588 = vmatpush3.bf16.msra.mxu0 %v1748_v58  ;;  %1623 = vmatpush3.bf16.msra.mxu1 %v1748_v58 }
 0x123   : > { %1589 = vmatprep.subr.bf16.mxu0 %v1749_v59  ;;  %1616 = vmatprep.subr.bf16.mxu1 %v1749_v59 }
 0x124   : > { %v570_v43 = vpack.c.bf16 %v554_v41, %v552_v40 }
 0x126   : > { %794 = vmatprep.mubr.bf16.mxu1 %v570_v43  ;;  %1590 = vmatpush3.bf16.msra.mxu0 %v1749_v59 }
 0x127   : > { %795 = vmatmul.mubr.bf16.gmra.mxu1 %v569_v44  ;;  %1591 = vmatprep.subr.bf16.mxu0 %v1750_v46 }
 0x128   : > { %1624 = vmatpush3.bf16.msra.mxu1 %v1749_v59 }
 0x129   : > { %1617 = vmatprep.subr.bf16.mxu1 %v1750_v46 }
 0x12a   : > { %1592 = vmatpush3.bf16.msra.mxu0 %v1750_v46 }
 0x12b   : > { %1593 = vmatprep.subr.bf16.mxu0 %v1751_v47 }
 0x12c   : > { %1625 = vmatpush3.bf16.msra.mxu1 %v1750_v46 }
 0x12d   : > { %1618 = vmatprep.subr.bf16.mxu1 %v1751_v47 }
 0x12e   : > { %1594 = vmatpush3.bf16.msra.mxu0 %v1751_v47 }
 0x130   : > { %1626 = vmatpush3.bf16.msra.mxu1 %v1751_v47 }
 0x1af   : > { %v1515_v48 = vpop.f32.mrf.mxu1 }
 0x1b1   : > { %v1516_v49 = vpop.f32.mrf.mxu1 }
 0x1b2   : > { %v1517_v50 = vadd.f32 %v1516_v49, %v1515_v48 }
 0x1b3   : > { %v1518_v52 = vpop.f32.mrf.mxu1 }
 0x1b4   : > { %v741_v54 = vadd.f32 %v1517_v50, %v2090_v51 }
 0x1b5   : > { %v1519_v53 = vpop.f32.mrf.mxu1 }
 0x1b6   : > { %v1520_v55 = vadd.f32 %v1519_v53, %v1518_v52  ;;  %v803_v61 = vmax.f32 %v741_v54, 0.0 }
 0x1b7   : > { %v1521_v56 = vpop.f32.mrf.mxu1 }
 0x1b8   : > { %v744_v57 = vadd.f32 %v1520_v55, %v2090_v51 }
 0x1b9   : > { %v1522_v60 = vpop.f32.mrf.mxu1 }
 0x1ba   : > { %v804_v62 = vmax.f32 %v744_v57, 0.0  ;;  %v1523_v63 = vadd.f32 %v1522_v60, %v1521_v56 }
 0x1bb   : > { %v1524_v0 = vpop.f32.mrf.mxu1 }
 0x1bc   : > { %v819_v1 = vpack.c.bf16 %v804_v62, %v803_v61  ;;  %v749_v3 = vadd.f32 %v1523_v63, %v2090_v51 }
 0x1bd   : > { %v1525_v2 = vpop.f32.mrf.mxu1 }
 0x1be   : > { %v1526_v4 = vadd.f32 %v1525_v2, %v1524_v0  ;;  %1595 = vmatprep.mubr.bf16.mxu0 %v819_v1  ;;  %v805_v8 = vmax.f32 %v749_v3, 0.0 }
 0x1bf   : > { %v1527_v5 = vpop.f32.mrf.mxu1 }
 0x1c0   : > { %v752_v6 = vadd.f32 %v1526_v4, %v2090_v51 }
 0x1c1   : > { %v1528_v7 = vpop.f32.mrf.mxu1 }
 0x1c2   : > { %v806_v9 = vmax.f32 %v752_v6, 0.0  ;;  %v1529_v10 = vadd.f32 %v1528_v7, %v1527_v5 }
 0x1c3   : > { %v1530_v11 = vpop.f32.mrf.mxu1 }
 0x1c4   : > { %v820_v12 = vpack.c.bf16 %v806_v9, %v805_v8  ;;  %v757_v14 = vadd.f32 %v1529_v10, %v2090_v51 }
 0x1c5   : > { %v1531_v13 = vpop.f32.mrf.mxu1 }
 0x1c6   : > { %v1532_v15 = vadd.f32 %v1531_v13, %v1530_v11  ;;  %1596 = vmatmul.mubr.bf16.vlgmr.msra.gmra.mxu0 %v820_v12  ;;  %v807_v19 = vmax.f32 %v757_v14, 0.0  ;;  %v1391_v13 = vld [vmem:[%s2231_s6] ss:$0 sm:$0xff] }
 0x1c7   : > { %v1533_v16 = vpop.f32.mrf.mxu1 }
 0x1c8   : > { %v760_v17 = vadd.f32 %v1532_v15, %v2090_v51 }
 0x1c9   : > { %v1534_v18 = vpop.f32.mrf.mxu1 }
 0x1ca   : > { %v808_v20 = vmax.f32 %v760_v17, 0.0  ;;  %v1535_v21 = vadd.f32 %v1534_v18, %v1533_v16 }
 0x1cb   : > { %v1536_v22 = vpop.f32.mrf.mxu1 }
 0x1cc   : > { %v821_v23 = vpack.c.bf16 %v808_v20, %v807_v19  ;;  %v765_v25 = vadd.f32 %v1535_v21, %v2090_v51 }
 0x1cd   : > { %v1537_v24 = vpop.f32.mrf.mxu1 }
 0x1ce   : > { %v1538_v26 = vadd.f32 %v1537_v24, %v1536_v22  ;;  %1599 = vmatprep.mubr.bf16.mxu0 %v821_v23  ;;  %v809_v30 = vmax.f32 %v765_v25, 0.0 }
 0x1cf   : > { %v1539_v27 = vpop.f32.mrf.mxu1 }
 0x1d0   : > { %v768_v28 = vadd.f32 %v1538_v26, %v2090_v51 }
 0x1d1   : > { %v1540_v29 = vpop.f32.mrf.mxu1 }
 0x1d2   : > { %v810_v31 = vmax.f32 %v768_v28, 0.0  ;;  %v1541_v32 = vadd.f32 %v1540_v29, %v1539_v27 }
 0x1d3   : > { %v1542_v33 = vpop.f32.mrf.mxu1 }
 0x1d4   : > { %v822_v34 = vpack.c.bf16 %v810_v31, %v809_v30  ;;  %v773_v36 = vadd.f32 %v1541_v32, %v2090_v51 }
 0x1d5   : > { %v1543_v35 = vpop.f32.mrf.mxu1 }
 0x1d6   : > { %v1544_v37 = vadd.f32 %v1543_v35, %v1542_v33  ;;  %1600 = vmatmul.mubr.bf16.gmra.mxu0 %v822_v34  ;;  %v811_v41 = vmax.f32 %v773_v36, 0.0 }
 0x1d7   : > { %v1545_v38 = vpop.f32.mrf.mxu1 }
 0x1d8   : > { %v776_v39 = vadd.f32 %v1544_v37, %v2090_v51 }
 0x1d9   : > { %v1546_v40 = vpop.f32.mrf.mxu1 }
 0x1da   : > { %v812_v42 = vmax.f32 %v776_v39, 0.0  ;;  %v1547_v43 = vadd.f32 %v1546_v40, %v1545_v38 }
 0x1db   : > { %v1548_v44 = vpop.f32.mrf.mxu1 }
 0x1dc   : > { %v823_v45 = vpack.c.bf16 %v812_v42, %v811_v41  ;;  %v781_v59 = vadd.f32 %v1547_v43, %v2090_v51 }
 0x1dd   : > { %v1549_v58 = vpop.f32.mrf.mxu1 }
 0x1de   : > { %v1550_v46 = vadd.f32 %v1549_v58, %v1548_v44  ;;  %1603 = vmatprep.mubr.bf16.mxu0 %v823_v45  ;;  %v813_v50 = vmax.f32 %v781_v59, 0.0 }
 0x1df   : > { %v1551_v47 = vpop.f32.mrf.mxu1 }
 0x1e0   : > { %v784_v48 = vadd.f32 %v1550_v46, %v2090_v51 }
 0x1e1   : > { %v1552_v49 = vpop.f32.mrf.mxu1 }
 0x1e2   : > { %v814_v52 = vmax.f32 %v784_v48, 0.0  ;;  %v1553_v53 = vadd.f32 %v1552_v49, %v1551_v47 }
 0x1e3   : > { %v1554_v54 = vpop.f32.mrf.mxu1 }
 0x1e4   : > { %v824_v55 = vpack.c.bf16 %v814_v52, %v813_v50  ;;  %v789_v57 = vadd.f32 %v1553_v53, %v2090_v51 }
 0x1e5   : > { %v1555_v56 = vpop.f32.mrf.mxu1 }
 0x1e6   : > { %v1556_v60 = vadd.f32 %v1555_v56, %v1554_v54  ;;  %1604 = vmatmul.mubr.bf16.gmra.mxu0 %v824_v55  ;;  %v815_v0 = vmax.f32 %v789_v57, 0.0 }
 0x1e7   : > { %v1557_v61 = vpop.f32.mrf.mxu1 }
 0x1e8   : > { %v792_v62 = vadd.f32 %v1556_v60, %v2090_v51 }
 0x1e9   : > { %v1558_v63 = vpop.f32.mrf.mxu1 }
 0x1ea   : > { %v816_v1 = vmax.f32 %v792_v62, 0.0  ;;  %v1559_v2 = vadd.f32 %v1558_v63, %v1557_v61 }
 0x1eb   : > { %v1560_v3 = vpop.f32.mrf.mxu1 }
 0x1ec   : > { %v825_v4 = vpack.c.bf16 %v816_v1, %v815_v0  ;;  %v797_v6 = vadd.f32 %v1559_v2, %v2090_v51 }
 0x1ed   : > { %v1561_v5 = vpop.f32.mrf.mxu1 }
 0x1ee   : > { %v1562_v7 = vadd.f32 %v1561_v5, %v1560_v3  ;;  %1607 = vmatprep.mubr.bf16.mxu1 %v825_v4  ;;  %v817_v9 = vmax.f32 %v797_v6, 0.0 }
 0x1f0   : > { %v800_v8 = vadd.f32 %v1562_v7, %v2090_v51 }
 0x1f2   : > { %v818_v10 = vmax.f32 %v800_v8, 0.0 }
 0x1f4   : > { %v826_v11 = vpack.c.bf16 %v818_v10, %v817_v9 }
 0x1f6   : > { %1608 = vmatmul.mubr.bf16.vlgmr.msra.gmra.mxu1 %v826_v11 }
 0x286   : > { %v1597_v12 = vpop.f32.mrf.mxu0 }
 0x287   : > { %v941_v16 = vadd.f32 %v1597_v12, %v1391_v13 }
 0x288   : > { %v932_v14 = vpop.f32.mrf.mxu0 }
 0x289   : > { %v933_v19 = vadd.f32 %v1391_v13, %v932_v14 }
 0x28a   : > { %v1598_v15 = vpop.f32.mrf.mxu0 }
 0x28b   : > { %v944_v17 = vadd.f32 %v1598_v15, %v1391_v13 }
 0x28c   : > { %v935_v18 = vpop.f32.mrf.mxu0 }
 0x28d   : > { %v1460_v20 = vpack.c.bf16 %v944_v17, %v941_v16  ;;  %v936_v21 = vadd.f32 %v1391_v13, %v935_v18 }
 0x28f   : > { %1492 = vst [vmem:[%s2112_s29 + $0x8] sm:$0xff] %v1460_v20   ;;  %v1455_v51 = vpack.c.bf16 %v936_v21, %v933_v19 }
 0x291   : > { %1456 = vst [vmem:[%s2112_s29] sm:$0xff] %v1455_v51  }
 0x296   : > { %v1601_v22 = vpop.f32.mrf.mxu0 }
 0x297   : > { %v957_v25 = vadd.f32 %v1601_v22, %v1391_v13 }
 0x298   : > { %v948_v23 = vpop.f32.mrf.mxu0 }
 0x299   : > { %v949_v28 = vadd.f32 %v1391_v13, %v948_v23 }
 0x29a   : > { %v1602_v24 = vpop.f32.mrf.mxu0 }
 0x29b   : > { %v960_v26 = vadd.f32 %v1602_v24, %v1391_v13 }
 0x29c   : > { %v951_v27 = vpop.f32.mrf.mxu0 }
 0x29d   : > { %v1470_v29 = vpack.c.bf16 %v960_v26, %v957_v25  ;;  %v952_v30 = vadd.f32 %v1391_v13, %v951_v27 }
 0x29f   : > { %1494 = vst [vmem:[%s2112_s29 + $0x18] sm:$0xff] %v1470_v29   ;;  %v1465_v31 = vpack.c.bf16 %v952_v30, %v949_v28 }
 0x2a1   : > { %1493 = vst [vmem:[%s2112_s29 + $0x10] sm:$0xff] %v1465_v31  }
 0x2a6   : > { %v1605_v32 = vpop.f32.mrf.mxu0 }
 0x2a7   : > { %v973_v35 = vadd.f32 %v1605_v32, %v1391_v13 }
 0x2a8   : > { %v964_v33 = vpop.f32.mrf.mxu0 }
 0x2a9   : > { %v965_v38 = vadd.f32 %v1391_v13, %v964_v33 }
 0x2aa   : > { %v1606_v34 = vpop.f32.mrf.mxu0 }
 0x2ab   : > { %v976_v36 = vadd.f32 %v1606_v34, %v1391_v13 }
 0x2ac   : > { %v967_v37 = vpop.f32.mrf.mxu0 }
 0x2ad   : > { %v1480_v39 = vpack.c.bf16 %v976_v36, %v973_v35  ;;  %v968_v40 = vadd.f32 %v1391_v13, %v967_v37 }
 0x2af   : > { %1496 = vst [vmem:[%s2112_s29 + $0x28] sm:$0xff] %v1480_v39   ;;  %v1475_v41 = vpack.c.bf16 %v968_v40, %v965_v38 }
 0x2b1   : > { %1495 = vst [vmem:[%s2112_s29 + $0x20] sm:$0xff] %v1475_v41  }
 0x2b6   : > { %v1609_v42 = vpop.f32.mrf.mxu1 }
 0x2b7   : > { %v989_v45 = vadd.f32 %v1609_v42, %v1391_v13 }
 0x2b8   : > { %v980_v43 = vpop.f32.mrf.mxu1 }
 0x2b9   : > { %v981_v46 = vadd.f32 %v1391_v13, %v980_v43 }
 0x2ba   : > { %v1610_v44 = vpop.f32.mrf.mxu1 }
 0x2bb   : > { %v992_v58 = vadd.f32 %v1610_v44, %v1391_v13 }
 0x2bc   : > { %v983_v59 = vpop.f32.mrf.mxu1 }
 0x2bd   : > { %v1490_v47 = vpack.c.bf16 %v992_v58, %v989_v45  ;;  %v984_v48 = vadd.f32 %v1391_v13, %v983_v59  ;;  %1081 = sbr.rel (!%p1906_p4) target bundleno = 755 (0x2f3), region = 52 }
 0x2bf   : > { %1498 = vst [vmem:[%s2112_s29 + $0x38] sm:$0xff] %v1490_v47   ;;  %v1485_v49 = vpack.c.bf16 %v984_v48, %v981_v46 }
 0x2c1   : > { %1497 = vst [vmem:[%s2112_s29 + $0x30] sm:$0xff] %v1485_v49  }
 0x2c2   : > { %s2241_s24 = smov (!%p1084_p8, %s1083_s24), 16 }
 0x2c3   : > { %s1418_s13 = sshll.u32 %s2241_s24, 6 }
 0x2c4   : > { %p1421_p9 = scmp.eq.s32.totalorder %s1418_s13, 0 }
 0x2c5   : > { %s2135_s14 = sshrl.u32 (!%p1421_p9), %s2241_s24, 4 }
 0x2c6   : > { %1092 = sbr.rel (%p1421_p9) target bundleno = 755 (0x2f3), region = 56  ;;  %p1422_p10 = scmp.le.s32.totalorder (!%p1421_p9), %s2135_s14, 0 }
 0x2cb   : > { %1307 = sbr.rel (%p1422_p10) target bundleno = 738 (0x2e2), region = 128  ;;  %s2234_s27 = smov (!%p1422_p10), %s2129_s15 }
 0x2cc   : > { %s2235_s9 = smov (!%p1422_p10), %s2112_s29  ;;  %s2144_s12 = smov (!%p1422_p10), 0  }
 0x2cd   : > { %s2146_s16 = smov (!%p1422_p10), 0  }
 0x2d0 LB: >> { %v1109_v50 = vld [vmem:[%s1814_s9] sm:$0xf]  ;;  %v1111_v52 = vld [vmem:[%s1814_s9 + $0x4] sm:$0xf]  ;;  %v1113_v53 = vld [vmem:[%s1814_s9 + $0x8] sm:$0xf]  ;;  %s1822_s16 = sphi %s2146_s16, %s1103_s16   ;;  %s1818_s12 = sphi %s2144_s12, %s2236_s12   ;;  %s1814_s9 = sphi %s2235_s9, %s1146_s9   ;;  %s1810_s27 = sphi %s2234_s27, %s1147_s27  }
 0x2d1   : >> { %1110 = vst [vmem:[%s1810_s27] sm:$0xf] %v1109_v50  ;;  %1112 = vst [vmem:[%s1810_s27 + $0x4] sm:$0xf] %v1111_v52  ;;  %v1115_v54 = vld [vmem:[%s1814_s9 + $0xc] sm:$0xf]  ;;  %s1141_s17 = sadd.s32 1, %s1818_s12 }
 0x2d2   : >> { %1114 = vst [vmem:[%s1810_s27 + $0x8] sm:$0xf] %v1113_v53  ;;  %v1117_v55 = vld [vmem:[%s1814_s9 + $0x10] sm:$0xf]  ;;  %v1119_v56 = vld [vmem:[%s1814_s9 + $0x14] sm:$0xf]  ;;  %p1142_p11 = scmp.ge.s32.totalorder %s1141_s17, %s2135_s14 }
 0x2d3   : >> { %1116 = vst [vmem:[%s1810_s27 + $0xc] sm:$0xf] %v1115_v54  ;;  %1118 = vst [vmem:[%s1810_s27 + $0x10] sm:$0xf] %v1117_v55  ;;  %v1121_v57 = vld [vmem:[%s1814_s9 + $0x18] sm:$0xf] }
 0x2d4   : >> { %1120 = vst [vmem:[%s1810_s27 + $0x14] sm:$0xf] %v1119_v56  ;;  %v1123_v60 = vld [vmem:[%s1814_s9 + $0x1c] sm:$0xf]  ;;  %v1125_v61 = vld [vmem:[%s1814_s9 + $0x20] sm:$0xf] }
 0x2d5   : >> { %1122 = vst [vmem:[%s1810_s27 + $0x18] sm:$0xf] %v1121_v57  ;;  %1124 = vst [vmem:[%s1810_s27 + $0x1c] sm:$0xf] %v1123_v60  ;;  %v1127_v62 = vld [vmem:[%s1814_s9 + $0x24] sm:$0xf] }
 0x2d6   : >> { %1126 = vst [vmem:[%s1810_s27 + $0x20] sm:$0xf] %v1125_v61  ;;  %v1129_v63 = vld [vmem:[%s1814_s9 + $0x28] sm:$0xf]  ;;  %v1131_v0 = vld [vmem:[%s1814_s9 + $0x2c] sm:$0xf] }
 0x2d7   : >> { %1128 = vst [vmem:[%s1810_s27 + $0x24] sm:$0xf] %v1127_v62  ;;  %1130 = vst [vmem:[%s1810_s27 + $0x28] sm:$0xf] %v1129_v63  ;;  %v1133_v1 = vld [vmem:[%s1814_s9 + $0x30] sm:$0xf] }
 0x2d8   : >> { %1132 = vst [vmem:[%s1810_s27 + $0x2c] sm:$0xf] %v1131_v0  ;;  %v1135_v2 = vld [vmem:[%s1814_s9 + $0x34] sm:$0xf]  ;;  %v1137_v3 = vld [vmem:[%s1814_s9 + $0x38] sm:$0xf] }
 0x2d9   : >> { %1134 = vst [vmem:[%s1810_s27 + $0x30] sm:$0xf] %v1133_v1  ;;  %1136 = vst [vmem:[%s1810_s27 + $0x34] sm:$0xf] %v1135_v2  ;;  %v1139_v4 = vld [vmem:[%s1814_s9 + $0x3c] sm:$0xf] }
 0x2da   : >> { %1138 = vst [vmem:[%s1810_s27 + $0x38] sm:$0xf] %v1137_v3  ;;  %1140 = vst [vmem:[%s1810_s27 + $0x3c] sm:$0xf] %v1139_v4  ;;  %s2243_s17 = smov (%p1142_p11, %s1141_s17), 0  ;;  %s1103_s16 = sadd.s32 1, %s1822_s16  }
 0x2db   : >> { %s1423_s18 = sshll.u32 %s2243_s17, 6  ;;  %p1102_p12 = scmp.ge.s32.totalorder %s1103_s16, %s2135_s14 }
 0x2dc   : >> { %s1146_s9 = scalar_lea.vmem %s2112_s29, %s1423_s18 [#allocation2]   ;;  %s1147_s27 = scalar_lea.vmem %s2129_s15, %s1423_s18  }
 0x2dd   : >> { %s2236_s12 = smov %s2243_s17  ;;  %1105 = sbr.rel (!%p1102_p12) target bundleno = 720 (0x2d0), region = 134 }
 0x2e2 PF: > { %s2207_s19 = sand.u32 15, %s2241_s24   ;;  %s1450_s20 = sshll.u32 %s2135_s14, 6 }
 0x2e3   : > { %s1152_s21 = scalar_lea.vmem %s2112_s29, %s1450_s20 [#allocation2]   ;;  %s1154_s22 = scalar_lea.vmem %s2129_s15, %s1450_s20  }
 0x2e4   : > { %p1428_p13 = scmp.le.s32.totalorder %s2207_s19, 0 }
 0x2e5   : > { %s1824_s23 = smov (!%p1428_p13), %s1154_s22   ;;  %s1828_s26 = smov (!%p1428_p13), %s1152_s21  }
 0x2e6   : > { %1321 = sbr.rel (%p1428_p13) target bundleno = 755 (0x2f3), region = 139  ;;  %s1832_s30 = smov (!%p1428_p13), 0  }
 0x2e7   : > { %s1836_s10 = smov (!%p1428_p13), 0  }
 0x2eb LB: >> { %v1164_v5 = vld [vmem:[%s1830_s26] sm:$0xf]  ;;  %s1166_s24 = sadd.s32 1, %s1834_s30  ;;  %s1158_s10 = sadd.s32 1, %s1838_s10   ;;  %s1838_s10 = sphi %s1836_s10, %s1158_s10   ;;  %s1834_s30 = sphi %s1832_s30, %s1833_s30   ;;  %s1830_s26 = sphi %s1828_s26, %s1171_s26   ;;  %s1826_s23 = sphi %s1824_s23, %s1172_s23  }
 0x2ec   : >> { %1165 = vst [vmem:[%s1826_s23] sm:$0xf] %v1164_v5  ;;  %p1167_p0 = scmp.ge.s32.totalorder %s1166_s24, %s2207_s19  ;;  %p1157_p1 = scmp.ge.s32.totalorder %s1158_s10, %s2207_s19 }
 0x2ee   : >> { %s2245_s24 = smov (%p1167_p0, %s1166_s24), 0  ;;  %1160 = sbr.rel (!%p1157_p1) target bundleno = 747 (0x2eb), region = 145 }
 0x2ef   : >> { %s1429_s29 = sshll.u32 %s2245_s24, 2  ;;  %s1833_s30 = smov %s2245_s24  }
 0x2f0   : >> { %s1171_s26 = scalar_lea.vmem %s1152_s21, %s1429_s29 [#allocation2]   ;;  %s1172_s23 = scalar_lea.vmem %s1154_s22, %s1429_s29  }
 0x2f3 PF: > { %p14_p2 = scmp.ge.s32.totalorder %s1896_s28, 4   ;;  %s2237_s24 = smov %s1802_s25 }
 0x2f4   : > { %s2238_s25 = smov %s1904_s8  ;;  %s2239_s26 = smov %s1896_s28 }
 0x2f5   :  { %16 = sbr.rel (!%p14_p2) target bundleno = 2 (0x2), region = 156 }

</bundles_post_ra>
